<compile_context>
chip_gen: v6e
topology: v6e:2x2x1
jax: 0.10.0
libtpu: 0.0.40
codegen_flags: <defaults>
</compile_context>

<pallas_src>
import functools

import jax
import jax.numpy as jnp
from jax.experimental import pallas as pl
from jax.experimental.pallas import tpu as pltpu

_INV_LN10 = 1.0 / float(jnp.log(10.0))


# --------------------------------------------------------------------------
# Kernel bodies
# --------------------------------------------------------------------------
def _rain_kernel_merged(x_ref, p_ref, o_ref, *, V):
    # x_ref: (tn, 2V) contiguous tile; channels are lane-aligned halves.
    # p_ref: (3, V) rows are (a, b, c).  o_ref: (tn, V).
    a = p_ref[0:1, :]
    b = p_ref[1:2, :]
    c = p_ref[2:3, :]

    x0 = x_ref[:, :V]        # dbz  (static, lane-aligned slice)
    x1 = x_ref[:, V:2 * V]   # zdr

    # log10(y + 1) = log1p(y) * 1/ln(10); log1p runs on the EUP slot.
    log10_term = jnp.log1p(jnp.maximum(x0, 0.0)) * _INV_LN10
    o_ref[...] = log10_term * a + x1 * b + c


def _rain_kernel_split(x0_ref, x1_ref, p_ref, o_ref):
    # Fallback path (V tiled or ragged V): channel-squeezed dense tiles.
    a = p_ref[0:1, :]
    b = p_ref[1:2, :]
    c = p_ref[2:3, :]

    log10_term = jnp.log1p(jnp.maximum(x0_ref[...], 0.0)) * _INV_LN10
    o_ref[...] = log10_term * a + x1_ref[...] * b + c


# --------------------------------------------------------------------------
# Tiling / VMEM helpers
# --------------------------------------------------------------------------
def _pick_vmem_limit_bytes():
    """3/4 of physical VMEM, capped at 96 MiB; conservative v7x fallback."""
    cap = None
    try:
        cap = pltpu.get_tpu_info().vmem_capacity_bytes
    except Exception:
        cap = None
    if not cap:
        cap = 64 * 1024 * 1024  # v7x-sized conservative default
    return min((int(cap) * 3) // 4, 96 * 1024 * 1024)


def _pick_tn(N, tile_n):
    """Row-tile size: clamp to N, but split in two if the N axis would
    otherwise be a single grid step (keeps both v7x TensorCores busy)."""
    tn = min(tile_n, N)
    if tn == N and N >= 16:
        tn = (((N + 1) // 2) + 7) // 8 * 8  # two tiles, multiple of 8
    return tn


# --------------------------------------------------------------------------
# Wrapper
# --------------------------------------------------------------------------
def quantitative_rain_forward(x, a, b, c, *, tile_n=1024, tile_v=1024):
    """x: (N, 2, V) float32; a, b, c: (V,) float32. Returns (N, V) float32."""
    N, two, V = x.shape
    assert two == 2, "channel dim must be 2 (dbz, zdr)"

    params = jnp.stack([a, b, c], axis=0)  # (3, V): single small param slab
    tn = _pick_tn(N, tile_n)
    vmem_limit = _pick_vmem_limit_bytes()

    cost = pl.CostEstimate(
        flops=6 * N * V,
        transcendentals=N * V,
        bytes_accessed=4 * (3 * N * V + 3 * V),
    )

    # ---- Fast path: one contiguous (tn, 2V) input stream -----------------
    if V % 128 == 0 and V <= tile_v:
        x2 = x.reshape(N, 2 * V)  # row-major reshape: free
        grid = (pl.cdiv(N, tn),)
        return pl.pallas_call(
            functools.partial(_rain_kernel_merged, V=V),
            out_shape=jax.ShapeDtypeStruct((N, V), jnp.float32),
            grid_spec=pltpu.PrefetchScalarGridSpec(
                num_scalar_prefetch=0,
                grid=grid,
                in_specs=[
                    pl.BlockSpec((tn, 2 * V), lambda i: (i, 0)),
                    pl.BlockSpec((3, V), lambda i: (0, 0)),
                ],
                out_specs=pl.BlockSpec((tn, V), lambda i: (i, 0)),
            ),
            compiler_params=pltpu.CompilerParams(
                dimension_semantics=("parallel",),
                vmem_limit_bytes=vmem_limit,
            ),
            cost_estimate=cost,
        )(x2, params)

    # ---- Fallback: V tiled (large V) or ragged V --------------------------
    tv = V if V <= tile_v else tile_v
    if tv != V:
        assert tv % 128 == 0

    # V-tiles outer, N-tiles inner -> param slab block index constant across
    # consecutive grid steps (one param DMA per V-tile).
    grid = (pl.cdiv(V, tv), pl.cdiv(N, tn))
    return pl.pallas_call(
        _rain_kernel_split,
        out_shape=jax.ShapeDtypeStruct((N, V), jnp.float32),
        grid_spec=pltpu.PrefetchScalarGridSpec(
            num_scalar_prefetch=0,
            grid=grid,
            in_specs=[
                # channel-squeezed views of x -> dense (tn, tv) VMEM tiles
                pl.BlockSpec((tn, pl.Squeezed(), tv), lambda v, i: (i, 0, v)),
                pl.BlockSpec((tn, pl.Squeezed(), tv), lambda v, i: (i, 1, v)),
                pl.BlockSpec((3, tv), lambda v, i: (0, v)),
            ],
            out_specs=pl.BlockSpec((tn, tv), lambda v, i: (i, v)),
        ),
        compiler_params=pltpu.CompilerParams(
            dimension_semantics=("parallel", "parallel"),
            vmem_limit_bytes=vmem_limit,
        ),
        cost_estimate=cost,
    )(x, x, params)


# --------------------------------------------------------------------------
# Reference + demo
# --------------------------------------------------------------------------
def _reference(x, a, b, c):
    x0 = x[:, 0]
    x1 = x[:, 1]
    return jnp.log10(jnp.maximum(x0, 0.0) + 1.0) * a + x1 * b + c


def _run_case(key, N, V, tile_v=1024):
    kx, _ = jax.random.split(key)
    x = jax.random.normal(kx, (N, 2, V), dtype=jnp.float32) * 10.0
    # Parameters match torch.nn.Parameter(torch.ones(vector_length)) init.
    a = jnp.ones((V,), dtype=jnp.float32)
    b = jnp.ones((V,), dtype=jnp.float32)
    c = jnp.ones((V,), dtype=jnp.float32)

    out = jax.block_until_ready(quantitative_rain_forward(x, a, b, c, tile_v=tile_v))
    ref = _reference(x, a, b, c)
    assert out.shape == (N, V)
    assert bool(jnp.all(jnp.isfinite(out))), f"non-finite output for N={N}, V={V}"
    assert jnp.allclose(out, ref, atol=1e-5, rtol=1e-5), f"mismatch for N={N}, V={V}"


if __name__ == "__main__":
    key = jax.random.PRNGKey(0)
    keys = jax.random.split(key, 4)

    # 1) Small case matching the module's forward: merged contiguous path.
    _run_case(keys[0], N=2, V=512)
    # 2) Merged path with multiple N tiles (exercises the two-TC tn split).
    _run_case(keys[1], N=40, V=256)
    # 3) Split (V-tiled) path with a partial final V tile.
    _run_case(keys[2], N=10, V=2560, tile_v=1024)
    # 4) Split path with ragged (non-128-multiple) V, full-extent lane tile.
    _run_case(keys[3], N=20, V=200)

    print("KERNEL_OK")
</pallas_src>

<mosaic_0001>
module attributes {stable_mosaic.version = 11 : i64} {
  func.func @_rain_kernel_merged(%arg0: i32, %arg1: memref<2x1024xf32, #tpu.memory_space<vmem>>, %arg2: memref<3x512xf32, #tpu.memory_space<vmem>>, %arg3: memref<2x512xf32, #tpu.memory_space<vmem>>) attributes {dimension_semantics = [#tpu.dimension_semantics<parallel>], iteration_bounds = array<i64: 1>, scalar_prefetch = 0 : i64, scratch_operands = 0 : i64, tpu.core_type = #tpu.core_type<tc>, window_params = [{transform_indices = @transform_0, window_bounds = array<i64: 2, 1024>}, {pipeline_mode = #tpu.pipeline_mode<synchronous>, transform_indices = @transform_1, window_bounds = array<i64: 3, 512>}, {transform_indices = @transform_2, window_bounds = array<i64: 2, 512>}]} {
    %c0 = arith.constant 0 : index
    %c0_0 = arith.constant 0 : index
    %0 = vector.load %arg2[%c0, %c0_0] : memref<3x512xf32, #tpu.memory_space<vmem>>, vector<1x512xf32>
    %c1 = arith.constant 1 : index
    %c0_1 = arith.constant 0 : index
    %1 = vector.load %arg2[%c1, %c0_1] : memref<3x512xf32, #tpu.memory_space<vmem>>, vector<1x512xf32>
    %c2 = arith.constant 2 : index
    %c0_2 = arith.constant 0 : index
    %2 = vector.load %arg2[%c2, %c0_2] : memref<3x512xf32, #tpu.memory_space<vmem>>, vector<1x512xf32>
    %c0_3 = arith.constant 0 : index
    %c0_4 = arith.constant 0 : index
    %3 = vector.load %arg1[%c0_3, %c0_4] : memref<2x1024xf32, #tpu.memory_space<vmem>>, vector<2x512xf32>
    %c0_5 = arith.constant 0 : index
    %c512 = arith.constant 512 : index
    %4 = vector.load %arg1[%c0_5, %c512] : memref<2x1024xf32, #tpu.memory_space<vmem>>, vector<2x512xf32>
    %cst = arith.constant 0.000000e+00 : f32
    %5 = vector.broadcast %cst : f32 to vector<2x512xf32>
    %6 = arith.maximumf %3, %5 : vector<2x512xf32>
    %7 = math.log1p %6 : vector<2x512xf32>
    %cst_6 = arith.constant 0.434294462 : f32
    %8 = vector.broadcast %cst_6 : f32 to vector<2x512xf32>
    %9 = arith.mulf %7, %8 : vector<2x512xf32>
    %10 = vector.broadcast %0 : vector<1x512xf32> to vector<2x512xf32>
    %11 = arith.mulf %9, %10 : vector<2x512xf32>
    %12 = vector.broadcast %1 : vector<1x512xf32> to vector<2x512xf32>
    %13 = arith.mulf %4, %12 : vector<2x512xf32>
    %14 = arith.addf %11, %13 : vector<2x512xf32>
    %15 = vector.broadcast %2 : vector<1x512xf32> to vector<2x512xf32>
    %16 = arith.addf %14, %15 : vector<2x512xf32>
    %c0_7 = arith.constant 0 : index
    %c0_8 = arith.constant 0 : index
    %17 = vector.load %arg3[%c0_7, %c0_8] : memref<2x512xf32, #tpu.memory_space<vmem>>, vector<2x512xf32>
    tpu.vector_store %arg3[%c0_7, %c0_8], %16 {strides = array<i32>} : memref<2x512xf32, #tpu.memory_space<vmem>>, vector<2x512xf32>,
    return
  }
  func.func @transform_0(%arg0: i32) -> (i32, i32) {
    %c0_i32 = arith.constant 0 : i32
    %c0_i32_0 = arith.constant 0 : i32
    return %arg0, %c0_i32 : i32, i32
  }
  func.func @transform_1(%arg0: i32) -> (i32, i32) {
    %c0_i32 = arith.constant 0 : i32
    %c0_i32_0 = arith.constant 0 : i32
    %c0_i32_1 = arith.constant 0 : i32
    return %c0_i32, %c0_i32_0 : i32, i32
  }
  func.func @transform_2(%arg0: i32) -> (i32, i32) {
    %c0_i32 = arith.constant 0 : i32
    %c0_i32_0 = arith.constant 0 : i32
    return %arg0, %c0_i32 : i32, i32
  }
}

</mosaic_0001>

<bundles_post_ra>
// kernel: tpu_custom_call.1
= control target key start
LH: loop header
LB: loop body
LE: loop exit
PB: predicated region body
PF: predicated region fallthrough
CT: control target
= control target key end

     0   :  { %7 = vsyncpa [#allocation3], 0  ;;  %s280_s0 = inlined_call_operand.hbm [shape: f32[2,1024], index: 0, kind: input, shape index: {}]   ;;  %s281_s1 = inlined_call_operand.hbm [shape: f32[3,512], index: 1, kind: input, shape index: {}]   ;;  %s282_s2 = inlined_call_operand.hbm [shape: f32[2,512], index: 2, kind: output, shape index: {}]  }
   0x1   :  { %8 = vsyncpa [#allocation6], 0 }
   0x2   :  { %9 = vsyncpa [#allocation4], 0  ;;  %s252_s9 = smov [#allocation2]   ;;  %s253_s11 = smov [#allocation5]  }
   0x3   :  { %s16_s10 = sshll.u32 %s252_s9, 4  ;;  %s26_s12 = sshll.u32 %s253_s11, 4  ;;  %s17_s10 = int_to_ptr.vmem [resolvable:$true] %s16_s10  ;;  %s27_s12 = int_to_ptr.vmem [resolvable:$true] %s26_s12 }
   0x4   :  { %s194_s13 = scalar_lea.vmem %s17_s10, 256  ;;  %p199_p1 = scmp.lt.s32.totalorder %s17_s10, %s17_s10 }
   0x5   :  { %p195_p0 = scmp.ne.s32.totalorder %s17_s10, %s194_s13  ;;  %p200_p2 = scmp.lt.s32.totalorder %s194_s13, %s194_s13 }
   0x7   :  { %p201_p3 = por %p200_p2, %p199_p1 }
   0x9   :  { %p202_p4 = pnand %p201_p3, %p195_p0 }
   0xb   :  { %205 = shalt.err (!%p202_p4)
}
   0xc   :  { %19 = dma.hbm_to_vmem [thread:$0]  %s280_s0, 256, %s17_s10, [#allocation3]  }
   0xd   :  { %s214_s16 = scalar_lea.vmem %s27_s12, 256  ;;  %p219_p6 = scmp.lt.s32.totalorder %s27_s12, %s27_s12 }
   0xe   :  { %p215_p5 = scmp.ne.s32.totalorder %s27_s12, %s214_s16  ;;  %p220_p7 = scmp.lt.s32.totalorder %s214_s16, %s214_s16 }
  0x10   :  { %p221_p8 = por %p220_p7, %p219_p6 }
  0x12   :  { %p222_p9 = pnand %p221_p8, %p215_p5 }
  0x14   :  { %225 = shalt.err (!%p222_p9)
}
  0x15   :  { %29 = dma.hbm_to_vmem [thread:$0]  %s281_s1, 256, %s27_s12, [#allocation6]  }
  0x16   :  { %246 = dma.done.wait [#allocation3], 256  }
  0x17   :  { %247 = vsyncadd [#allocation3], 4294967040 }
  0x18   :  { %248 = dma.done.wait [#allocation6], 256  }
  0x19   :  { %249 = vsyncadd [#allocation6], 4294967040  ;;  %v55_v0 = vlaneseq  ;;  %v41_v2 = vld [vmem:[#allocation2] sm:$0xff]  ;;  %v254_v4 = vmov 1983009808   ;;  %v42_v44 = vld [vmem:[#allocation2 + $0x8] sm:$0xff] }
  0x1a   :  { %v43_v3 = vmax.f32 %v41_v2, 0.0  ;;  %v74_v5 = vunpack.c.l.s4 %v254_v4  ;;  %v38_v10 = vld [vmem:[#allocation5 + $0x1] ss:$4 sm:$0xf]  ;;  %s255_s0 = smov [#allocation7]  }
  0x1b   :  { %v56_v1 = vshrl.u32 %v55_v0, 7  ;;  %v36_v12 = vld [vmem:[#allocation5] ss:$4 sm:$0xf]  ;;  %s170_s1 = sshll.u32 %s255_s0, 4  ;;  %s171_s1 = int_to_ptr.vmem [resolvable:$true] %s170_s1 }
  0x1c   :  { %v44_v11 = vadd.f32 1.0, %v43_v3  ;;  %v75_v13 = vunpack.c.0.s8 %v74_v5  ;;  %v40_v22 = vld [vmem:[#allocation5 + $0x2] ss:$4 sm:$0xf]  ;;  %v47_v23 = vmul.f32 -0.5, %v43_v3  ;;  %s226_s19 = scalar_lea.vmem %s171_s1, 128  ;;  %p231_p11 = scmp.lt.s32.totalorder %s171_s1, %s171_s1 }
  0x1d   :  { %v57_v6 = vsub.s32 0, %v56_v1  ;;  %v61_v7 = vsub.s32 1, %v56_v1  ;;  %v65_v8 = vsub.s32 2, %v56_v1  ;;  %v69_v9 = vsub.s32 3, %v56_v1  ;;  %p227_p10 = scmp.ne.s32.totalorder %s171_s1, %s226_s19  ;;  %p232_p12 = scmp.lt.s32.totalorder %s226_s19, %s226_s19 }
  0x1e   :  { %184 = vlog2.f32 %v44_v11  ;;  %v78_v24 = vsub.s32 %v75_v13, %v56_v1  ;;  %v48_v33 = vadd.f32 1.0, %v47_v23  ;;  %v50_v34 = vand.u32 2147483647, %v43_v3 }
  0x1f   :  { %v94_v14 = vrot.slane %v38_v10, %v57_v6  ;;  %v98_v15 = vrot.slane %v38_v10, %v61_v7  ;;  %v102_v16 = vrot.slane %v38_v10, %v65_v8  ;;  %v106_v17 = vrot.slane %v38_v10, %v69_v9  ;;  %p233_p13 = por %p232_p12, %p231_p11 }
  0x20   :  { %v58_v18 = vrot.slane %v36_v12, %v57_v6  ;;  %v62_v19 = vrot.slane %v36_v12, %v61_v7  ;;  %v66_v20 = vrot.slane %v36_v12, %v65_v8  ;;  %v70_v21 = vrot.slane %v36_v12, %v69_v9 }
  0x21   :  { %v107_v25 = vcombine.low %v94_v14, %v98_v15  ;;  %v108_v26 = vcombine.low %v102_v16, %v106_v17  ;;  %v131_v29 = vrot.slane %v40_v22, %v57_v6  ;;  %v135_v30 = vrot.slane %v40_v22, %v61_v7  ;;  %p234_p0 = pnand %p233_p13, %p227_p10 }
  0x22   :  { %v71_v27 = vcombine.low %v58_v18, %v62_v19  ;;  %v72_v28 = vcombine.low %v66_v20, %v70_v21  ;;  %v139_v31 = vrot.slane %v40_v22, %v65_v8  ;;  %v143_v32 = vrot.slane %v40_v22, %v69_v9 }
  0x23   :  { %v115_v35 = vrot.slane %v107_v25, %v78_v24  ;;  %v122_v36 = vrot.slane %v108_v26, %v78_v24  ;;  %v144_v39 = vcombine.low %v131_v29, %v135_v30  ;;  %v49_v41 = vmul.f32 %v48_v33, %v43_v3 }
  0x24   :  { %v79_v37 = vrot.slane %v71_v27, %v78_v24  ;;  %v86_v38 = vrot.slane %v72_v28, %v78_v24  ;;  %v145_v40 = vcombine.low %v139_v31, %v143_v32  ;;  %vm51_vm0 = vcmp.lt.f32.partialorder %v50_v34, 0.0004427343 }
  0x25   :  { %v123_v43 = vcombine.low %v115_v35, %v122_v36  ;;  %v152_v47 = vrot.slane %v144_v39, %v78_v24 }
  0x26   :  { %v87_v46 = vcombine.low %v79_v37, %v86_v38  ;;  %v159_v48 = vrot.slane %v145_v40, %v78_v24 }
  0x27   :  { %v125_v51 = vmul.f32 %v123_v43, %v42_v44 }
  0x28   :  { %v160_v53 = vcombine.low %v152_v47, %v159_v48 }
  0x2b   :  { %v185_v42 = vpop.eup %184 }
  0x2c   :  { %v46_v45 = vmul.f32 0.6931472, %v185_v42 }
  0x2e   :  { %v52_v49 = vsel %vm51_vm0, %v49_v41, %v46_v45 }
  0x2f   :  { %v53_v50 = vmul.f32 0.43429446, %v52_v49 }
  0x31   :  { %v89_v52 = vmul.f32 %v87_v46, %v53_v50 }
  0x33   :  { %v126_v54 = vadd.f32 %v125_v51, %v89_v52 }
  0x35   :  { %v162_v55 = vadd.f32 %v160_v53, %v126_v54 }
  0x37   :  { %163 = vst [vmem:[#allocation7] sm:$0xff] %v162_v55 }
  0x38   :  { %237 = shalt.err (!%p234_p0)
}
  0x39   :  { %173 = dma.vmem_to_hbm [thread:$0]  %s171_s1, 128, %s282_s2, [#allocation4]  }
  0x3a   :  { %250 = dma.done.wait [#allocation4], 128  }
  0x3b   :  { %251 = vsyncadd [#allocation4], 4294967168 }
  0x3c   :  { %177 = vsyncpa [#allocation3], 1 }
  0x3d   :  { %178 = vsyncpa [#allocation6], 1 }
  0x3e   :  { %179 = vsyncpa [#allocation4], 1 }

</bundles_post_ra>
